<compile_context>
chip_gen: v5e
topology: v5e:2x2
jax: 0.10.0
libtpu: 0.0.40
codegen_flags: <defaults>
</compile_context>

<pallas_src>
import functools

import jax
import jax.numpy as jnp
from jax.experimental import pallas as pl
from jax.experimental.pallas import tpu as pltpu

_LANE = 128


def _round_up(x, m):
    return -(-x // m) * m


# Packed-parameter layout (single f32[25] array living in SMEM), with tanh folding:
#   [0:6)   0.5 * w1[0, :]        (feature 0 -> 6 hidden units)
#   [6:12)  0.5 * w1[1, :]        (feature 1 -> 6 hidden units)
#   [12:18) 0.5 * b1
#   [18:24) 0.5 * w2[:, 0]
#   [24]    b2 + 0.5 * sum(w2)
def _pack_params(w1, b1, w2, b2):
    # sigmoid(z) = 0.5*tanh(0.5*z) + 0.5, hence
    #   y = sum_j sigmoid(z_j)*w2_j + b2
    #     = sum_j tanh(0.5*z_j) * (0.5*w2_j) + (b2 + 0.5*sum_j w2_j)
    # Folding the 0.5 factors into the (25 scalar) packed params costs nothing per
    # element and leaves 1 EUP tanh + 6 VPU ops per hidden unit in the kernel.
    w1h = 0.5 * w1.astype(jnp.float32)                      # [2, 6]
    b1h = 0.5 * b1.astype(jnp.float32).reshape(-1)          # [6]
    w2h = 0.5 * w2.astype(jnp.float32).reshape(-1)          # [6]
    b2f = b2.astype(jnp.float32).reshape(-1) + jnp.sum(w2h)  # [1]
    return jnp.concatenate([w1h.reshape(-1), b1h, w2h, b2f])


def mlp_kernel(params_ref, x_ref, o_ref):
    """params_ref: SMEM f32[25]; x_ref: VMEM f32[2, R, 128]; o_ref: VMEM f32[R, 128]."""
    x0 = x_ref[0]                                  # [R, 128]  feature 0, batch-dense vregs
    x1 = x_ref[1]                                  # [R, 128]  feature 1
    acc = jnp.zeros_like(x0) + params_ref[24]      # b2 + 0.5*sum(w2)
    # K=2 / K=6 contractions unrolled as scalar-broadcast FMAs (VPU) + one tanh (EUP)
    # per hidden unit — no MXU fill/drain for ~50 FLOPs/element.
    for j in range(6):
        z = x0 * params_ref[j] + x1 * params_ref[6 + j] + params_ref[12 + j]
        acc = acc + jnp.tanh(z) * params_ref[18 + j]
    o_ref[...] = acc                               # dense (R,128) store, unmasked vst


@functools.partial(jax.jit, static_argnames=("tile_rows", "force_pallas"))
def mlp_forward(x, w1, b1, w2, b2, *, tile_rows=4096, force_pallas=False):
    """Forward of Linear(2,6) -> Sigmoid -> Linear(6,1)  (y = x @ W^T + b semantics).

    x:  [B, 2] float32
    w1: [2, 6], b1: [6], w2: [6, 1], b2: [1]   (already transposed vs. torch weights)
    Returns [B, 1] float32.
    """
    B = x.shape[0]
    x = x.astype(jnp.float32)

    if not force_pallas and B < 2048:
        # Launch + grid-step overhead dwarfs ~50*B FLOPs; fused XLA path wins outright.
        return jax.nn.sigmoid(x @ w1 + b1) @ w2 + b2

    params = _pack_params(w1, b1, w2, b2)

    # Rows of 128 lanes; round to a multiple of 8 so blocks are (8,128)-aligned.
    rows = _round_up(max(1, -(-B // _LANE)), 8)
    R = min(tile_rows, rows)
    if rows >= 16:
        # Keep the grid >= 2 steps so the 'parallel' axis can use both v7x TensorCores.
        R = min(R, _round_up(-(-rows // 2), 8))
    rows_p = _round_up(rows, R)
    Bp = rows_p * _LANE

    # Single fused relayout under jit: pad + deinterleave features -> [2, rows_p, 128].
    x_pad = jnp.pad(x, ((0, Bp - B), (0, 0))) if Bp != B else x
    x_t = x_pad.T.reshape(2, rows_p, _LANE)

    grid_spec = pltpu.PrefetchScalarGridSpec(
        num_scalar_prefetch=1,                                   # params land in SMEM
        grid=(rows_p // R,),
        in_specs=[pl.BlockSpec((2, R, _LANE), lambda i, p: (0, i, 0))],
        out_specs=pl.BlockSpec((R, _LANE), lambda i, p: (i, 0)),
    )
    out = pl.pallas_call(
        mlp_kernel,
        out_shape=jax.ShapeDtypeStruct((rows_p, _LANE), jnp.float32),
        grid_spec=grid_spec,
        compiler_params=pltpu.CompilerParams(
            dimension_semantics=("parallel",)),
    )(params, x_t)

    # Padded lanes hold sigmoid(b1)@w2 + b2 (finite garbage) and are sliced off here.
    return out.reshape(Bp)[:B, None]


def init_params():
    # Deterministic init; shapes match the PyTorch module (stored pre-transposed):
    #   input : Linear(2, 6)  -> W1^T [2, 6], b1 [6]
    #   output: Linear(6, 1)  -> W2^T [6, 1], b2 [1]
    k = jax.random.PRNGKey(42)
    k1, k2, k3, k4 = jax.random.split(k, 4)
    w1 = jax.random.normal(k1, (2, 6), dtype=jnp.float32) * 0.5
    b1 = jax.random.normal(k2, (6,), dtype=jnp.float32) * 0.1
    w2 = jax.random.normal(k3, (6, 1), dtype=jnp.float32) * 0.5
    b2 = jax.random.normal(k4, (1,), dtype=jnp.float32) * 0.1
    return w1, b1, w2, b2


def _ref(x, w1, b1, w2, b2):
    return jax.nn.sigmoid(x @ w1 + b1) @ w2 + b2


if __name__ == "__main__":
    w1, b1, w2, b2 = init_params()

    # Small batch (as implied by the module), forced onto the Pallas path.
    B = 8
    x = jax.random.normal(jax.random.PRNGKey(0), (B, 2), dtype=jnp.float32)
    out = jax.block_until_ready(mlp_forward(x, w1, b1, w2, b2, force_pallas=True))
    ref = _ref(x, w1, b1, w2, b2)
    assert out.shape == (B, 1)
    assert jnp.allclose(out, ref, atol=1e-5), "mismatch vs reference (B=8)"

    # Larger, ragged batch exercising the multi-step 'parallel' grid path (2 tiles).
    B2 = 3000
    x2 = jax.random.normal(jax.random.PRNGKey(1), (B2, 2), dtype=jnp.float32)
    out2 = jax.block_until_ready(mlp_forward(x2, w1, b1, w2, b2, force_pallas=True))
    ref2 = _ref(x2, w1, b1, w2, b2)
    assert out2.shape == (B2, 1)
    assert jnp.allclose(out2, ref2, atol=1e-5), "mismatch vs reference (B=3000)"

    print("KERNEL_OK")
</pallas_src>

<mosaic_0001>
module attributes {stable_mosaic.version = 11 : i64} {
  func.func @mlp_kernel(%arg0: i32, %arg1: memref<25xf32, #tpu.memory_space<smem>>, %arg2: memref<2x8x128xf32, #tpu.memory_space<vmem>>, %arg3: memref<8x128xf32, #tpu.memory_space<vmem>>) attributes {dimension_semantics = [#tpu.dimension_semantics<parallel>], iteration_bounds = array<i64: 1>, scalar_prefetch = 1 : i64, scratch_operands = 0 : i64, tpu.core_type = #tpu.core_type<tc>, window_params = [{transform_indices = @transform_0, window_bounds = array<i64: 2, 8, 128>}, {transform_indices = @transform_1, window_bounds = array<i64: 8, 128>}]} {
    %c0 = arith.constant 0 : index
    %c0_0 = arith.constant 0 : index
    %c0_1 = arith.constant 0 : index
    %0 = vector.load %arg2[%c0, %c0_0, %c0_1] : memref<2x8x128xf32, #tpu.memory_space<vmem>>, vector<1x8x128xf32>
    %1 = vector.shape_cast %0 : vector<1x8x128xf32> to vector<8x128xf32>
    %c1 = arith.constant 1 : index
    %c0_2 = arith.constant 0 : index
    %c0_3 = arith.constant 0 : index
    %2 = vector.load %arg2[%c1, %c0_2, %c0_3] : memref<2x8x128xf32, #tpu.memory_space<vmem>>, vector<1x8x128xf32>
    %3 = vector.shape_cast %2 : vector<1x8x128xf32> to vector<8x128xf32>
    %cst = arith.constant 0.000000e+00 : f32
    %4 = vector.broadcast %cst : f32 to vector<8x128xf32>
    %c24 = arith.constant 24 : index
    %5 = memref.load %arg1[%c24] : memref<25xf32, #tpu.memory_space<smem>>
    %6 = vector.broadcast %5 : f32 to vector<8x128xf32>
    %7 = arith.addf %4, %6 : vector<8x128xf32>
    %c0_4 = arith.constant 0 : index
    %8 = memref.load %arg1[%c0_4] : memref<25xf32, #tpu.memory_space<smem>>
    %9 = vector.broadcast %8 : f32 to vector<8x128xf32>
    %10 = arith.mulf %1, %9 : vector<8x128xf32>
    %c6 = arith.constant 6 : index
    %11 = memref.load %arg1[%c6] : memref<25xf32, #tpu.memory_space<smem>>
    %12 = vector.broadcast %11 : f32 to vector<8x128xf32>
    %13 = arith.mulf %3, %12 : vector<8x128xf32>
    %14 = arith.addf %10, %13 : vector<8x128xf32>
    %c12 = arith.constant 12 : index
    %15 = memref.load %arg1[%c12] : memref<25xf32, #tpu.memory_space<smem>>
    %16 = vector.broadcast %15 : f32 to vector<8x128xf32>
    %17 = arith.addf %14, %16 : vector<8x128xf32>
    %18 = math.tanh %17 : vector<8x128xf32>
    %c18 = arith.constant 18 : index
    %19 = memref.load %arg1[%c18] : memref<25xf32, #tpu.memory_space<smem>>
    %20 = vector.broadcast %19 : f32 to vector<8x128xf32>
    %21 = arith.mulf %18, %20 : vector<8x128xf32>
    %22 = arith.addf %7, %21 : vector<8x128xf32>
    %c1_5 = arith.constant 1 : index
    %23 = memref.load %arg1[%c1_5] : memref<25xf32, #tpu.memory_space<smem>>
    %24 = vector.broadcast %23 : f32 to vector<8x128xf32>
    %25 = arith.mulf %1, %24 : vector<8x128xf32>
    %c7 = arith.constant 7 : index
    %26 = memref.load %arg1[%c7] : memref<25xf32, #tpu.memory_space<smem>>
    %27 = vector.broadcast %26 : f32 to vector<8x128xf32>
    %28 = arith.mulf %3, %27 : vector<8x128xf32>
    %29 = arith.addf %25, %28 : vector<8x128xf32>
    %c13 = arith.constant 13 : index
    %30 = memref.load %arg1[%c13] : memref<25xf32, #tpu.memory_space<smem>>
    %31 = vector.broadcast %30 : f32 to vector<8x128xf32>
    %32 = arith.addf %29, %31 : vector<8x128xf32>
    %33 = math.tanh %32 : vector<8x128xf32>
    %c19 = arith.constant 19 : index
    %34 = memref.load %arg1[%c19] : memref<25xf32, #tpu.memory_space<smem>>
    %35 = vector.broadcast %34 : f32 to vector<8x128xf32>
    %36 = arith.mulf %33, %35 : vector<8x128xf32>
    %37 = arith.addf %22, %36 : vector<8x128xf32>
    %c2 = arith.constant 2 : index
    %38 = memref.load %arg1[%c2] : memref<25xf32, #tpu.memory_space<smem>>
    %39 = vector.broadcast %38 : f32 to vector<8x128xf32>
    %40 = arith.mulf %1, %39 : vector<8x128xf32>
    %c8 = arith.constant 8 : index
    %41 = memref.load %arg1[%c8] : memref<25xf32, #tpu.memory_space<smem>>
    %42 = vector.broadcast %41 : f32 to vector<8x128xf32>
    %43 = arith.mulf %3, %42 : vector<8x128xf32>
    %44 = arith.addf %40, %43 : vector<8x128xf32>
    %c14 = arith.constant 14 : index
    %45 = memref.load %arg1[%c14] : memref<25xf32, #tpu.memory_space<smem>>
    %46 = vector.broadcast %45 : f32 to vector<8x128xf32>
    %47 = arith.addf %44, %46 : vector<8x128xf32>
    %48 = math.tanh %47 : vector<8x128xf32>
    %c20 = arith.constant 20 : index
    %49 = memref.load %arg1[%c20] : memref<25xf32, #tpu.memory_space<smem>>
    %50 = vector.broadcast %49 : f32 to vector<8x128xf32>
    %51 = arith.mulf %48, %50 : vector<8x128xf32>
    %52 = arith.addf %37, %51 : vector<8x128xf32>
    %c3 = arith.constant 3 : index
    %53 = memref.load %arg1[%c3] : memref<25xf32, #tpu.memory_space<smem>>
    %54 = vector.broadcast %53 : f32 to vector<8x128xf32>
    %55 = arith.mulf %1, %54 : vector<8x128xf32>
    %c9 = arith.constant 9 : index
    %56 = memref.load %arg1[%c9] : memref<25xf32, #tpu.memory_space<smem>>
    %57 = vector.broadcast %56 : f32 to vector<8x128xf32>
    %58 = arith.mulf %3, %57 : vector<8x128xf32>
    %59 = arith.addf %55, %58 : vector<8x128xf32>
    %c15 = arith.constant 15 : index
    %60 = memref.load %arg1[%c15] : memref<25xf32, #tpu.memory_space<smem>>
    %61 = vector.broadcast %60 : f32 to vector<8x128xf32>
    %62 = arith.addf %59, %61 : vector<8x128xf32>
    %63 = math.tanh %62 : vector<8x128xf32>
    %c21 = arith.constant 21 : index
    %64 = memref.load %arg1[%c21] : memref<25xf32, #tpu.memory_space<smem>>
    %65 = vector.broadcast %64 : f32 to vector<8x128xf32>
    %66 = arith.mulf %63, %65 : vector<8x128xf32>
    %67 = arith.addf %52, %66 : vector<8x128xf32>
    %c4 = arith.constant 4 : index
    %68 = memref.load %arg1[%c4] : memref<25xf32, #tpu.memory_space<smem>>
    %69 = vector.broadcast %68 : f32 to vector<8x128xf32>
    %70 = arith.mulf %1, %69 : vector<8x128xf32>
    %c10 = arith.constant 10 : index
    %71 = memref.load %arg1[%c10] : memref<25xf32, #tpu.memory_space<smem>>
    %72 = vector.broadcast %71 : f32 to vector<8x128xf32>
    %73 = arith.mulf %3, %72 : vector<8x128xf32>
    %74 = arith.addf %70, %73 : vector<8x128xf32>
    %c16 = arith.constant 16 : index
    %75 = memref.load %arg1[%c16] : memref<25xf32, #tpu.memory_space<smem>>
    %76 = vector.broadcast %75 : f32 to vector<8x128xf32>
    %77 = arith.addf %74, %76 : vector<8x128xf32>
    %78 = math.tanh %77 : vector<8x128xf32>
    %c22 = arith.constant 22 : index
    %79 = memref.load %arg1[%c22] : memref<25xf32, #tpu.memory_space<smem>>
    %80 = vector.broadcast %79 : f32 to vector<8x128xf32>
    %81 = arith.mulf %78, %80 : vector<8x128xf32>
    %82 = arith.addf %67, %81 : vector<8x128xf32>
    %c5 = arith.constant 5 : index
    %83 = memref.load %arg1[%c5] : memref<25xf32, #tpu.memory_space<smem>>
    %84 = vector.broadcast %83 : f32 to vector<8x128xf32>
    %85 = arith.mulf %1, %84 : vector<8x128xf32>
    %c11 = arith.constant 11 : index
    %86 = memref.load %arg1[%c11] : memref<25xf32, #tpu.memory_space<smem>>
    %87 = vector.broadcast %86 : f32 to vector<8x128xf32>
    %88 = arith.mulf %3, %87 : vector<8x128xf32>
    %89 = arith.addf %85, %88 : vector<8x128xf32>
    %c17 = arith.constant 17 : index
    %90 = memref.load %arg1[%c17] : memref<25xf32, #tpu.memory_space<smem>>
    %91 = vector.broadcast %90 : f32 to vector<8x128xf32>
    %92 = arith.addf %89, %91 : vector<8x128xf32>
    %93 = math.tanh %92 : vector<8x128xf32>
    %c23 = arith.constant 23 : index
    %94 = memref.load %arg1[%c23] : memref<25xf32, #tpu.memory_space<smem>>
    %95 = vector.broadcast %94 : f32 to vector<8x128xf32>
    %96 = arith.mulf %93, %95 : vector<8x128xf32>
    %97 = arith.addf %82, %96 : vector<8x128xf32>
    %c0_6 = arith.constant 0 : index
    %c0_7 = arith.constant 0 : index
    %98 = vector.load %arg3[%c0_6, %c0_7] : memref<8x128xf32, #tpu.memory_space<vmem>>, vector<8x128xf32>
    tpu.vector_store %arg3[%c0_6, %c0_7], %97 {strides = array<i32>} : memref<8x128xf32, #tpu.memory_space<vmem>>, vector<8x128xf32>,
    return
  }
  func.func @transform_0(%arg0: i32, %arg1: memref<25xf32, #tpu.memory_space<smem>>) -> (i32, i32, i32) {
    %c0_i32 = arith.constant 0 : i32
    %c0_i32_0 = arith.constant 0 : i32
    %c0_i32_1 = arith.constant 0 : i32
    return %c0_i32, %arg0, %c0_i32_0 : i32, i32, i32
  }
  func.func @transform_1(%arg0: i32, %arg1: memref<25xf32, #tpu.memory_space<smem>>) -> (i32, i32) {
    %c0_i32 = arith.constant 0 : i32
    %c0_i32_0 = arith.constant 0 : i32
    return %arg0, %c0_i32 : i32, i32
  }
}

</mosaic_0001>

<bundles_post_ra>
// kernel: mlp_forward.1
= control target key start
LH: loop header
LB: loop body
LE: loop exit
PB: predicated region body
PF: predicated region fallthrough
CT: control target
= control target key end

     0   :  { %s170_s12 = smov [#allocation3]   ;;  %s238_s0 = inlined_call_operand.vmem [shape: f32[25], index: 0, kind: input, shape index: {}]   ;;  %s239_s1 = inlined_call_operand.vmem [shape: f32[2,8,128], index: 1, kind: input, shape index: {}]   ;;  %s240_s2 = inlined_call_operand.vmem [shape: f32[8,128], index: 2, kind: output, shape index: {}]  }
   0x1   :  { %s8_s11 = sshll.u32 %s238_s0, 4  ;;  %s9_s11 = int_to_ptr.vmem [resolvable:$true] %s8_s11 }
   0x2   :  { %11 = dma.vmem_to_smem %s9_s11, 16, %s170_s12, [#allocation2] }
   0x3   :  { %168 = dma.done.wait [#allocation2], 16 }
   0x4   :  { %169 = vsyncadd [#allocation2], 4294967280 }
   0x5   :  { %14 = sfence }
   0x6   :  { %s23_s13 = sld [smem:[#allocation3]]  ;;  %v194_v0 = vld [vmem:[%s239_s1] sm:$0xff]  ;;  %v199_v1 = vld [vmem:[%s239_s1 + $0x8] sm:$0xff] }
   0x7   :  { %s120_s14 = sld [smem:[#allocation3 + $0x6]] }
   0x8   :  { %s121_s15 = sld [smem:[#allocation3 + $0xc]] }
   0x9   :  { %s189_s16 = sld [smem:[#allocation3 + $0x18]] }
   0xa   :  { %s123_s19 = sld [smem:[#allocation3 + $0x1]] }
   0xb   :  { %s124_s0 = sld [smem:[#allocation3 + $0x7]] }
   0xc   :  { %v24_v2 = vstv %s23_s13  ;;  %s125_s22 = sld [smem:[#allocation3 + $0xd]] }
   0xd   :  { %v25_v3 = vmul.f32 %v24_v2, %v194_v0  ;;  %v27_v4 = vstv %s120_s14  ;;  %s202_s23 = sld [smem:[#allocation3 + $0x12]] }
   0xe   :  { %v28_v5 = vmul.f32 %v199_v1, %v27_v4  ;;  %s127_s24 = sld [smem:[#allocation3 + $0x2]]  ;;  %v31_v6 = vstv %s121_s15 }
   0xf   :  { %s128_s25 = sld [smem:[#allocation3 + $0x8]]  ;;  %v21_v27 = vstv %s189_s16 }
  0x10   :  { %v29_v7 = vadd.f32 %v28_v5, %v25_v3  ;;  %v39_v8 = vstv %s123_s19  ;;  %s205_s26 = sld [smem:[#allocation3 + $0xe]] }
  0x11   :  { %v40_v9 = vmul.f32 %v39_v8, %v194_v0  ;;  %v42_v10 = vstv %s124_s0  ;;  %s208_s1 = sld [smem:[#allocation3 + $0x13]] }
  0x12   :  { %v32_v11 = vadd.f32 %v31_v6, %v29_v7  ;;  %v43_v12 = vmul.f32 %v199_v1, %v42_v10  ;;  %s131_s27 = sld [smem:[#allocation3 + $0x3]]  ;;  %v46_v13 = vstv %s125_s22 }
  0x13   :  { %s132_s28 = sld [smem:[#allocation3 + $0x9]]  ;;  %v35_v21 = vstv %s202_s23 }
  0x14   :  { %144 = vtanh.f32 %v32_v11  ;;  %v44_v14 = vadd.f32 %v43_v12, %v40_v9  ;;  %v54_v15 = vstv %s127_s24  ;;  %s211_s29 = sld [smem:[#allocation3 + $0xf]] }
  0x15   :  { %v55_v16 = vmul.f32 %v54_v15, %v194_v0  ;;  %v57_v17 = vstv %s128_s25  ;;  %s214_s30 = sld [smem:[#allocation3 + $0x14]] }
  0x16   :  { %v47_v18 = vadd.f32 %v46_v13, %v44_v14  ;;  %v58_v19 = vmul.f32 %v199_v1, %v57_v17  ;;  %s135_s3 = sld [smem:[#allocation3 + $0x4]]  ;;  %v61_v20 = vstv %s205_s26 }
  0x17   :  { %s136_s4 = sld [smem:[#allocation3 + $0xa]]  ;;  %v50_v32 = vstv %s208_s1 }
  0x18   :  { %146 = vtanh.f32 %v47_v18  ;;  %v59_v22 = vadd.f32 %v58_v19, %v55_v16  ;;  %v69_v23 = vstv %s131_s27  ;;  %s219_s5 = sld [smem:[#allocation3 + $0x10]] }
  0x19   :  { %v70_v24 = vmul.f32 %v69_v23, %v194_v0  ;;  %v72_v25 = vstv %s132_s28  ;;  %s222_s6 = sld [smem:[#allocation3 + $0x15]] }
  0x1a   :  { %v145_v26 = vpop.eup %144  ;;  %v62_v28 = vadd.f32 %v61_v20, %v59_v22  ;;  %v73_v29 = vmul.f32 %v199_v1, %v72_v25  ;;  %s139_s7 = sld [smem:[#allocation3 + $0x5]]  ;;  %v76_v31 = vstv %s211_s29 }
  0x1b   :  { %v36_v30 = vmul.f32 %v145_v26, %v35_v21  ;;  %s140_s8 = sld [smem:[#allocation3 + $0xb]]  ;;  %v65_v43 = vstv %s214_s30 }
  0x1c   :  { %148 = vtanh.f32 %v62_v28  ;;  %v74_v33 = vadd.f32 %v73_v29, %v70_v24  ;;  %v84_v34 = vstv %s135_s3  ;;  %s141_s9 = sld [smem:[#allocation3 + $0x11]] }
  0x1d   :  { %v37_v35 = vadd.f32 %v36_v30, %v21_v27  ;;  %v85_v36 = vmul.f32 %v84_v34, %v194_v0  ;;  %v87_v37 = vstv %s136_s4  ;;  %s138_s10 = sld [smem:[#allocation3 + $0x16]] }
  0x1e   :  { %v147_v38 = vpop.eup %146  ;;  %v77_v39 = vadd.f32 %v76_v31, %v74_v33  ;;  %v88_v40 = vmul.f32 %v199_v1, %v87_v37  ;;  %v91_v42 = vstv %s219_s5  ;;  %s142_s11 = sld [smem:[#allocation3 + $0x17]] }
  0x1f   :  { %v51_v41 = vmul.f32 %v147_v38, %v50_v32  ;;  %v80_v54 = vstv %s222_s6 }
  0x20   :  { %150 = vtanh.f32 %v77_v39  ;;  %v89_v44 = vadd.f32 %v88_v40, %v85_v36  ;;  %v99_v45 = vstv %s139_s7 }
  0x21   :  { %v52_v46 = vadd.f32 %v51_v41, %v37_v35  ;;  %v100_v47 = vmul.f32 %v99_v45, %v194_v0  ;;  %v102_v48 = vstv %s140_s8 }
  0x22   :  { %v149_v49 = vpop.eup %148  ;;  %v92_v50 = vadd.f32 %v91_v42, %v89_v44  ;;  %v103_v51 = vmul.f32 %v199_v1, %v102_v48  ;;  %v106_v53 = vstv %s141_s9 }
  0x23   :  { %v66_v52 = vmul.f32 %v149_v49, %v65_v43  ;;  %v95_v60 = vstv %s138_s10 }
  0x24   :  { %152 = vtanh.f32 %v92_v50  ;;  %v104_v55 = vadd.f32 %v103_v51, %v100_v47  ;;  %v110_v0 = vstv %s142_s11 }
  0x25   :  { %v67_v56 = vadd.f32 %v66_v52, %v52_v46 }
  0x26   :  { %v151_v57 = vpop.eup %150  ;;  %v107_v58 = vadd.f32 %v106_v53, %v104_v55 }
  0x27   :  { %v81_v59 = vmul.f32 %v151_v57, %v80_v54 }
  0x28   :  { %154 = vtanh.f32 %v107_v58 }
  0x29   :  { %v82_v61 = vadd.f32 %v81_v59, %v67_v56 }
  0x2a   :  { %v153_v62 = vpop.eup %152 }
  0x2b   :  { %v96_v63 = vmul.f32 %v153_v62, %v95_v60 }
  0x2d   :  { %v97_v2 = vadd.f32 %v96_v63, %v82_v61 }
  0x2e   :  { %v155_v3 = vpop.eup %154 }
  0x2f   :  { %v111_v4 = vmul.f32 %v155_v3, %v110_v0 }
  0x31   :  { %v112_v1 = vadd.f32 %v111_v4, %v97_v2 }
  0x33   :  { %113 = vst [vmem:[%s240_s2] sm:$0xff] %v112_v1 }

</bundles_post_ra>
